<compile_context>
chip_gen: v6e
topology: v6e:2x2x1
jax: 0.10.0
libtpu: 0.0.40
codegen_flags: <defaults>
</compile_context>

<pallas_src>
import jax
import jax.numpy as jnp
from jax.experimental import pallas as pl
from jax.experimental.pallas import tpu as pltpu


_TINY_FAST_PATH_ELEMS = 1024  # below this, plain XLA elementwise wins


def _round_up(n, m):
    return ((n + m - 1) // m) * m


def _choose_tiling(n_elems):
    """Pick (lane_w, block_rows, padded_rows) for a flat array of n elems.

    Prefer lane widths / block heights that divide exactly so the wrapper does
    no pad / slice copies.
    """
    lane_w = None
    for cand in (512, 256, 128):
        if n_elems % cand == 0:
            lane_w = cand
            break
    if lane_w is None:
        # TODO(synk): ragged sizes fall back to a wrapper-side pad/slice; an
        # in-kernel masked tail (pltpu.store under @pl.when) would avoid the
        # extra ~7N HBM bytes in that case.
        lane_w = 512 if n_elems >= 512 * 8 else 128

    rows = pl.cdiv(n_elems, lane_w)

    if rows <= 1024:
        # Single block covering the full row extent (allowed even when
        # rows % 8 != 0 because the block equals the full array dims).
        block_rows = rows
    else:
        # 1024x512 f32 = 2 MiB/stream -> 7 streams x 2 buffers = 28 MiB,
        # inside the explicit 48 MiB scoped-VMEM limit on every generation
        # (v5e/v6e: 128 MiB physical; v7x: 64 MiB physical).
        block_rows = None
        for cand in (1024, 512, 256, 128, 64, 32, 16, 8):
            if rows % cand == 0:
                block_rows = cand
                break
        if block_rows is None:
            block_rows = 1024  # rare ragged fallback: pad rows up

    padded_rows = _round_up(rows, block_rows)
    return lane_w, block_rows, padded_rows


def _make_kernel(t_is_scalar, a_is_scalar, m_is_scalar):
    def kernel(x_ref, t_ref, a_ref, m_ref, p2_ref, p3_ref, p4_ref):
        x = x_ref[...]
        t = t_ref[0] if t_is_scalar else t_ref[...]
        a = a_ref[0] if a_is_scalar else a_ref[...]
        m = m_ref[0] if m_is_scalar else m_ref[...]
        p2 = x + t
        p3 = p2 + a
        p4 = p3 * m
        p2_ref[...] = p2
        p3_ref[...] = p3
        p4_ref[...] = p4
    return kernel


def excersize_model_forward(x, mytensor, elem_add, elem_multiply):
    """Pallas port of ExcersizeModel.forward; returns (p2, p3, p4)."""
    x = jnp.asarray(x)
    orig_shape = x.shape
    dtype = x.dtype
    n = x.size

    params = [jnp.asarray(p) for p in (mytensor, elem_add, elem_multiply)]

    # Tiny-input fast path: kernel launch + pipeline prologue dwarfs the work.
    if n <= _TINY_FAST_PATH_ELEMS:
        t, a, m = (p.astype(dtype) for p in params)
        p2 = x + t
        p3 = p2 + a
        p4 = p3 * m
        return p2, p3, p4

    lane_w, block_rows, padded_rows = _choose_tiling(n)
    padded_n = padded_rows * lane_w
    pad = padded_n - n

    def _prep_full(a):
        a = a.astype(dtype).reshape(-1)
        if pad:
            a = jnp.pad(a, (0, pad))
        return a.reshape(padded_rows, lane_w)  # bitcast when pad == 0

    block_spec = pl.BlockSpec((block_rows, lane_w), lambda i: (i, 0))
    smem_spec = pl.BlockSpec(memory_space=pltpu.MemorySpace.SMEM)

    operands = [_prep_full(x)]
    in_specs = [block_spec]
    scalar_flags = []
    for p in params:
        if p.size == 1:
            # Broadcastable scalar parameter: keep it SMEM-resident instead of
            # materializing + streaming a full-size HBM array.
            operands.append(p.astype(dtype).reshape(1))
            in_specs.append(smem_spec)
            scalar_flags.append(True)
        else:
            if p.shape != orig_shape:
                # TODO(synk): non-scalar broadcastable params (e.g. [1,C,1,1])
                # are still materialized to full size; a resident VMEM block
                # plus in-kernel broadcast would cut their HBM traffic too.
                p = jnp.broadcast_to(p, orig_shape)
            operands.append(_prep_full(p))
            in_specs.append(block_spec)
            scalar_flags.append(False)

    n_streamed = 1 + sum(1 for f in scalar_flags if not f)
    itemsize = jnp.dtype(dtype).itemsize
    cost = pl.CostEstimate(
        flops=3 * n,                                      # 2 adds + 1 mul / elem
        transcendentals=0,
        bytes_accessed=(n_streamed + 3) * padded_n * itemsize,
    )

    out_struct = jax.ShapeDtypeStruct((padded_rows, lane_w), dtype)

    p2f, p3f, p4f = pl.pallas_call(
        _make_kernel(*scalar_flags),
        out_shape=(out_struct, out_struct, out_struct),
        grid=(padded_rows // block_rows,),
        in_specs=in_specs,
        out_specs=(block_spec, block_spec, block_spec),
        compiler_params=pltpu.CompilerParams(
            # TODO(synk): on v7x, measure pltpu.CORE_PARALLEL here — plain
            # "parallel" may leave the second TensorCore idle on a 1-D grid.
            dimension_semantics=("parallel",),
            vmem_limit_bytes=48 << 20,
        ),
        cost_estimate=cost,
    )(*operands)

    def _unprep(a):
        if pad:
            return a.reshape(-1)[:n].reshape(orig_shape)
        return a.reshape(orig_shape)  # bitcast

    return _unprep(p2f), _unprep(p3f), _unprep(p4f)


if __name__ == "__main__":
    key = jax.random.PRNGKey(0)
    k_x, k_t, k_a, k_m, k_big = jax.random.split(key, 5)

    fwd = jax.jit(excersize_model_forward)

    # ---- Case 1: module-consistent small shape, full-size parameters ----
    shape = (2, 4, 16, 16)  # [B, C, H, W]
    x = jax.random.normal(k_x, shape, dtype=jnp.float32)
    mytensor = jax.random.normal(k_t, shape, dtype=jnp.float32)
    elem_add = jax.random.normal(k_a, shape, dtype=jnp.float32)
    elem_multiply = jax.random.normal(k_m, shape, dtype=jnp.float32)

    p2, p3, p4 = fwd(x, mytensor, elem_add, elem_multiply)
    jax.block_until_ready((p2, p3, p4))

    r2 = x + mytensor
    r3 = r2 + elem_add
    r4 = r3 * elem_multiply
    assert p2.shape == shape and p3.shape == shape and p4.shape == shape
    assert jnp.allclose(p2, r2, atol=1e-6)
    assert jnp.allclose(p3, r3, atol=1e-6)
    assert jnp.allclose(p4, r4, atol=1e-6)

    # ---- Case 2: scalar (broadcastable) parameters -> SMEM-resident path ----
    t_s = jnp.float32(0.5)
    a_s = jnp.float32(-1.25)
    m_s = jnp.float32(2.0)
    q2, q3, q4 = fwd(x, t_s, a_s, m_s)
    jax.block_until_ready((q2, q3, q4))
    s2 = x + t_s
    s3 = s2 + a_s
    s4 = s3 * m_s
    assert jnp.allclose(q2, s2, atol=1e-6)
    assert jnp.allclose(q3, s3, atol=1e-6)
    assert jnp.allclose(q4, s4, atol=1e-6)

    # ---- Case 3: larger shape to exercise the multi-block grid path ----
    big_shape = (8, 8, 128, 128)  # 1,048,576 elems -> rows=2048, grid=(2,)
    kx, kt, ka, km = jax.random.split(k_big, 4)
    xb = jax.random.normal(kx, big_shape, dtype=jnp.float32)
    tb = jax.random.normal(kt, big_shape, dtype=jnp.float32)
    ab = jax.random.normal(ka, big_shape, dtype=jnp.float32)
    mb = jax.random.normal(km, big_shape, dtype=jnp.float32)
    b2, b3, b4 = fwd(xb, tb, ab, mb)
    jax.block_until_ready((b2, b3, b4))
    rb2 = xb + tb
    rb3 = rb2 + ab
    rb4 = rb3 * mb
    assert jnp.allclose(b2, rb2, atol=1e-6)
    assert jnp.allclose(b3, rb3, atol=1e-6)
    assert jnp.allclose(b4, rb4, atol=1e-6)

    print("KERNEL_OK")
</pallas_src>

<mosaic_0001>
module attributes {stable_mosaic.version = 11 : i64} {
  func.func @kernel(%arg0: i32, %arg1: memref<4x512xf32, #tpu.memory_space<vmem>>, %arg2: memref<4x512xf32, #tpu.memory_space<vmem>>, %arg3: memref<4x512xf32, #tpu.memory_space<vmem>>, %arg4: memref<4x512xf32, #tpu.memory_space<vmem>>, %arg5: memref<4x512xf32, #tpu.memory_space<vmem>>, %arg6: memref<4x512xf32, #tpu.memory_space<vmem>>, %arg7: memref<4x512xf32, #tpu.memory_space<vmem>>) attributes {dimension_semantics = [#tpu.dimension_semantics<parallel>], iteration_bounds = array<i64: 1>, scalar_prefetch = 0 : i64, scratch_operands = 0 : i64, tpu.core_type = #tpu.core_type<tc>, window_params = [{transform_indices = @transform_0, window_bounds = array<i64: 4, 512>}, {transform_indices = @transform_1, window_bounds = array<i64: 4, 512>}, {transform_indices = @transform_2, window_bounds = array<i64: 4, 512>}, {transform_indices = @transform_3, window_bounds = array<i64: 4, 512>}, {transform_indices = @transform_4, window_bounds = array<i64: 4, 512>}, {transform_indices = @transform_5, window_bounds = array<i64: 4, 512>}, {transform_indices = @transform_6, window_bounds = array<i64: 4, 512>}]} {
    %c0 = arith.constant 0 : index
    %c0_0 = arith.constant 0 : index
    %0 = vector.load %arg1[%c0, %c0_0] : memref<4x512xf32, #tpu.memory_space<vmem>>, vector<4x512xf32>
    %c0_1 = arith.constant 0 : index
    %c0_2 = arith.constant 0 : index
    %1 = vector.load %arg2[%c0_1, %c0_2] : memref<4x512xf32, #tpu.memory_space<vmem>>, vector<4x512xf32>
    %c0_3 = arith.constant 0 : index
    %c0_4 = arith.constant 0 : index
    %2 = vector.load %arg3[%c0_3, %c0_4] : memref<4x512xf32, #tpu.memory_space<vmem>>, vector<4x512xf32>
    %c0_5 = arith.constant 0 : index
    %c0_6 = arith.constant 0 : index
    %3 = vector.load %arg4[%c0_5, %c0_6] : memref<4x512xf32, #tpu.memory_space<vmem>>, vector<4x512xf32>
    %4 = arith.addf %0, %1 : vector<4x512xf32>
    %5 = arith.addf %4, %2 : vector<4x512xf32>
    %6 = arith.mulf %5, %3 : vector<4x512xf32>
    %c0_7 = arith.constant 0 : index
    %c0_8 = arith.constant 0 : index
    %7 = vector.load %arg5[%c0_7, %c0_8] : memref<4x512xf32, #tpu.memory_space<vmem>>, vector<4x512xf32>
    tpu.vector_store %arg5[%c0_7, %c0_8], %4 {strides = array<i32>} : memref<4x512xf32, #tpu.memory_space<vmem>>, vector<4x512xf32>,
    %c0_9 = arith.constant 0 : index
    %c0_10 = arith.constant 0 : index
    %8 = vector.load %arg6[%c0_9, %c0_10] : memref<4x512xf32, #tpu.memory_space<vmem>>, vector<4x512xf32>
    tpu.vector_store %arg6[%c0_9, %c0_10], %5 {strides = array<i32>} : memref<4x512xf32, #tpu.memory_space<vmem>>, vector<4x512xf32>,
    %c0_11 = arith.constant 0 : index
    %c0_12 = arith.constant 0 : index
    %9 = vector.load %arg7[%c0_11, %c0_12] : memref<4x512xf32, #tpu.memory_space<vmem>>, vector<4x512xf32>
    tpu.vector_store %arg7[%c0_11, %c0_12], %6 {strides = array<i32>} : memref<4x512xf32, #tpu.memory_space<vmem>>, vector<4x512xf32>,
    return
  }
  func.func @transform_0(%arg0: i32) -> (i32, i32) {
    %c0_i32 = arith.constant 0 : i32
    %c0_i32_0 = arith.constant 0 : i32
    return %arg0, %c0_i32 : i32, i32
  }
  func.func @transform_1(%arg0: i32) -> (i32, i32) {
    %c0_i32 = arith.constant 0 : i32
    %c0_i32_0 = arith.constant 0 : i32
    return %arg0, %c0_i32 : i32, i32
  }
  func.func @transform_2(%arg0: i32) -> (i32, i32) {
    %c0_i32 = arith.constant 0 : i32
    %c0_i32_0 = arith.constant 0 : i32
    return %arg0, %c0_i32 : i32, i32
  }
  func.func @transform_3(%arg0: i32) -> (i32, i32) {
    %c0_i32 = arith.constant 0 : i32
    %c0_i32_0 = arith.constant 0 : i32
    return %arg0, %c0_i32 : i32, i32
  }
  func.func @transform_4(%arg0: i32) -> (i32, i32) {
    %c0_i32 = arith.constant 0 : i32
    %c0_i32_0 = arith.constant 0 : i32
    return %arg0, %c0_i32 : i32, i32
  }
  func.func @transform_5(%arg0: i32) -> (i32, i32) {
    %c0_i32 = arith.constant 0 : i32
    %c0_i32_0 = arith.constant 0 : i32
    return %arg0, %c0_i32 : i32, i32
  }
  func.func @transform_6(%arg0: i32) -> (i32, i32) {
    %c0_i32 = arith.constant 0 : i32
    %c0_i32_0 = arith.constant 0 : i32
    return %arg0, %c0_i32 : i32, i32
  }
}

</mosaic_0001>

<bundles_post_ra>
// kernel: excersize_model_forward.1
= control target key start
LH: loop header
LB: loop body
LE: loop exit
PB: predicated region body
PF: predicated region fallthrough
CT: control target
= control target key end

     0   :  { %s129_s0 = inlined_call_operand.vmem [shape: f32[4,512], index: 0, kind: input, shape index: {}]   ;;  %s130_s1 = inlined_call_operand.vmem [shape: f32[4,512], index: 1, kind: input, shape index: {}]   ;;  %s131_s2 = inlined_call_operand.vmem [shape: f32[4,512], index: 2, kind: input, shape index: {}]   ;;  %s132_s3 = inlined_call_operand.vmem [shape: f32[4,512], index: 3, kind: input, shape index: {}]   ;;  %s133_s4 = inlined_call_operand.vmem [shape: f32[4,512], index: 4, kind: output, shape index: {0}]   ;;  %s134_s5 = inlined_call_operand.vmem [shape: f32[4,512], index: 5, kind: output, shape index: {1}]   ;;  %s135_s6 = inlined_call_operand.vmem [shape: f32[4,512], index: 6, kind: output, shape index: {2}]  }
   0x1   :  { %v20_v0 = vld [vmem:[%s129_s0] sm:$0xff]  ;;  %v21_v2 = vld [vmem:[%s129_s0 + $0x8] sm:$0xff] }
   0x2   :  { %v22_v1 = vld [vmem:[%s130_s1] sm:$0xff]  ;;  %v23_v4 = vld [vmem:[%s130_s1 + $0x8] sm:$0xff] }
   0x3   :  { %v28_v3 = vadd.f32 %v22_v1, %v20_v0  ;;  %v24_v5 = vld [vmem:[%s131_s2] sm:$0xff]  ;;  %v25_v6 = vld [vmem:[%s131_s2 + $0x8] sm:$0xff]  ;;  %v29_v7 = vadd.f32 %v23_v4, %v21_v2 }
   0x4   :  { %v26_v8 = vld [vmem:[%s132_s3] sm:$0xff]  ;;  %v27_v10 = vld [vmem:[%s132_s3 + $0x8] sm:$0xff] }
   0x5   :  { %34 = vst [vmem:[%s133_s4] sm:$0xff] %v28_v3  ;;  %v30_v9 = vadd.f32 %v28_v3, %v24_v5  ;;  %35 = vst [vmem:[%s133_s4 + $0x8] sm:$0xff] %v29_v7  ;;  %v31_v11 = vadd.f32 %v29_v7, %v25_v6 }
   0x7   :  { %36 = vst [vmem:[%s134_s5] sm:$0xff] %v30_v9  ;;  %v32_v12 = vmul.f32 %v30_v9, %v26_v8  ;;  %37 = vst [vmem:[%s134_s5 + $0x8] sm:$0xff] %v31_v11  ;;  %v33_v13 = vmul.f32 %v31_v11, %v27_v10 }
   0x9   :  { %38 = vst [vmem:[%s135_s6] sm:$0xff] %v32_v12  ;;  %39 = vst [vmem:[%s135_s6 + $0x8] sm:$0xff] %v33_v13 }

</bundles_post_ra>
